<compile_context>
chip_gen: v6e
topology: v6e:2x2x1
jax: 0.10.0
libtpu: 0.0.40
codegen_flags: <defaults>
</compile_context>

<pallas_src>
import functools

import jax
import jax.numpy as jnp
from jax.experimental import pallas as pl
from jax.experimental.pallas import tpu as pltpu


def _round_up(x, m):
    return (x + m - 1) // m * m


def _qstar_kernel(x_ref, wcat_ref, bcat_ref, b2w_ref, b2b_ref, out_ref, *,
                  n_agents, n_states, hidden_dim):
    A, S, H = n_agents, n_states, hidden_dim

    # One fused hyper-network matmul, feature-major (batch on lanes).
    # Row layout of the fused result:
    #   [ w1 : A*H | b1 : H | w2 : H | b2a : H ]
    s_t = x_ref[pl.ds(0, S), :]                                       # (S, TB)
    fused = (jnp.dot(wcat_ref[...], s_t, preferred_element_type=jnp.float32)
             + bcat_ref[...])                                          # (F, TB) f32

    b1 = fused[A * H:A * H + H, :]                                     # (H, TB)
    w2 = fused[A * H + H:A * H + 2 * H, :]                             # (H, TB)
    b2h = jnp.maximum(fused[A * H + 2 * H:A * H + 3 * H, :], 0.0)      # ReLU (H, TB)

    # hidden = elu(bmm(q.view(-1,1,A), w1.view(-1,A,H)) + b1), feature-major:
    #   hidden[h, b] = sum_a q[a, b] * w1[a*H + h, b] + b1[h, b]       (A is tiny)
    hidden = b1
    for a in range(A):
        q_a = x_ref[pl.ds(S + a, 1), :].astype(jnp.float32)            # (1, TB)
        hidden = hidden + q_a * fused[a * H:(a + 1) * H, :]
    # ELU (alpha=1): x > 0 ? x : exp(x) - 1   (clamp before exp for dead branch)
    hidden = jnp.where(hidden > 0.0, hidden,
                       jnp.exp(jnp.minimum(hidden, 0.0)) - 1.0)

    # q_total = bmm(hidden, w2) + (relu(b2a) @ b2b_w + b2b_b): ONE fused
    # sublane reduction over H, plus the SMEM scalar bias.
    q_total = jnp.sum(hidden * w2 + b2h * b2w_ref[...], axis=0, keepdims=True)
    out_ref[...] = (q_total + b2b_ref[0, 0]).astype(out_ref.dtype)     # (1, TB)


def _default_tile_rows():
    # v5e/v6e have 128 MiB of VMEM per TensorCore; v7x has 64 MiB.
    try:
        vmem = getattr(pltpu.get_tpu_info(), "vmem_capacity_bytes", 64 << 20)
    except Exception:
        vmem = 64 << 20
    return 8192 if vmem > (96 << 20) else 4096


def qstar_forward(q_values, states, params, *, n_agents, n_states,
                  qmix_hidden_dim, tile_b=None, input_dtype=jnp.bfloat16):
    """q_values: (episode_num, episode_len, n_agents); states: (..., n_states)."""
    episode_num = q_values.shape[0]
    A, S, H = n_agents, n_states, qmix_hidden_dim
    F = A * H + 3 * H

    q_flat = q_values.reshape(-1, A)
    s_flat = states.reshape(-1, S)
    B = q_flat.shape[0]

    # Single fused, feature-major input stream: (S + A, B), batch on lanes.
    x_t = jnp.concatenate([s_flat, q_flat], axis=1).astype(input_dtype).T

    # Fuse the four state-side hyper layers into one (F, S) weight / (F, 1) bias.
    wcat_t = jnp.concatenate(
        [params["w1_w"], params["b1_w"], params["w2_w"], params["b2a_w"]],
        axis=1).T.astype(input_dtype)                                  # (F, S)
    bcat_t = jnp.concatenate(
        [params["w1_b"], params["b1_b"], params["w2_b"], params["b2a_b"]],
        axis=1).T.astype(jnp.float32)                                  # (F, 1)
    b2w = params["b2b_w"].astype(jnp.float32)                          # (H, 1)
    b2b = params["b2b_b"].reshape(1, 1).astype(jnp.float32)            # SMEM scalar

    # ---- tile selection: per-generation VMEM cap, >=2 steps for v7x's 2 TCs.
    if tile_b is None:
        tile_b = _default_tile_rows()
    tile_b = max(128, _round_up(int(tile_b), 128))
    if B > tile_b:
        tile = tile_b
    elif B >= 1024:
        tile = _round_up(pl.cdiv(B, 2), 128)     # 2 grid steps for 2 TensorCores
    else:
        tile = B                                  # single full-extent block
    grid_b = pl.cdiv(B, tile)

    # ~4 KiB of VMEM per batch row (double-buffered blocks + f32 temps).
    vmem_limit = int(min(max(4096 * tile + (8 << 20), 32 << 20), 100 << 20))

    kernel = functools.partial(_qstar_kernel, n_agents=A, n_states=S,
                               hidden_dim=H)

    out = pl.pallas_call(
        kernel,
        out_shape=jax.ShapeDtypeStruct((1, B), jnp.float32),
        grid_spec=pltpu.PrefetchScalarGridSpec(
            num_scalar_prefetch=0,
            grid=(grid_b,),
            in_specs=[
                pl.BlockSpec((S + A, tile), lambda i: (0, i)),          # xT
                pl.BlockSpec((F, S), lambda i: (0, 0)),                 # fused W
                pl.BlockSpec((F, 1), lambda i: (0, 0)),                 # fused b
                pl.BlockSpec((H, 1), lambda i: (0, 0)),                 # hyper_b2[2].w
                pl.BlockSpec(memory_space=pltpu.MemorySpace.SMEM),      # hyper_b2[2].b
            ],
            out_specs=pl.BlockSpec((1, tile), lambda i: (0, i)),
        ),
        compiler_params=pltpu.CompilerParams(
            dimension_semantics=("parallel",),
            vmem_limit_bytes=vmem_limit),
    )(x_t, wcat_t, bcat_t, b2w, b2b)

    return out.reshape(episode_num, -1, 1)


def _linear_params(key, fan_in, fan_out):
    # PyTorch nn.Linear default init: U(-1/sqrt(fan_in), 1/sqrt(fan_in))
    kw, kb = jax.random.split(key)
    bound = 1.0 / (fan_in ** 0.5)
    w = jax.random.uniform(kw, (fan_in, fan_out), jnp.float32, -bound, bound)
    b = jax.random.uniform(kb, (1, fan_out), jnp.float32, -bound, bound)
    return w, b


def init_params(key, n_agents, n_states, qmix_hidden_dim):
    ks = jax.random.split(key, 5)
    w1_w, w1_b = _linear_params(ks[0], n_states, n_agents * qmix_hidden_dim)  # hyper_w1
    b1_w, b1_b = _linear_params(ks[1], n_states, qmix_hidden_dim)             # hyper_b1
    w2_w, w2_b = _linear_params(ks[2], n_states, qmix_hidden_dim)             # hyper_w2
    b2a_w, b2a_b = _linear_params(ks[3], n_states, qmix_hidden_dim)           # hyper_b2[0]
    b2b_w, b2b_b = _linear_params(ks[4], qmix_hidden_dim, 1)                  # hyper_b2[2]
    return dict(w1_w=w1_w, w1_b=w1_b, b1_w=b1_w, b1_b=b1_b,
                w2_w=w2_w, w2_b=w2_b, b2a_w=b2a_w, b2a_b=b2a_b,
                b2b_w=b2b_w, b2b_b=b2b_b)


def qstar_reference(q_values, states, params, *, n_agents, n_states, qmix_hidden_dim):
    episode_num = q_values.shape[0]
    q = q_values.reshape(-1, 1, n_agents)
    s = states.reshape(-1, n_states)
    w1 = (s @ params["w1_w"] + params["w1_b"]).reshape(-1, n_agents, qmix_hidden_dim)
    b1 = (s @ params["b1_w"] + params["b1_b"]).reshape(-1, 1, qmix_hidden_dim)
    pre = jnp.einsum("bia,bah->bih", q, w1) + b1
    hidden = jnp.where(pre > 0, pre, jnp.exp(jnp.minimum(pre, 0.0)) - 1.0)
    w2 = (s @ params["w2_w"] + params["w2_b"]).reshape(-1, qmix_hidden_dim, 1)
    b2h = jnp.maximum(s @ params["b2a_w"] + params["b2a_b"], 0.0)
    b2 = (b2h @ params["b2b_w"] + params["b2b_b"]).reshape(-1, 1, 1)
    q_total = jnp.einsum("bih,bho->bio", hidden, w2) + b2
    return q_total.reshape(episode_num, -1, 1)


if __name__ == "__main__":
    # args: n_agents=4, n_states=32, qmix_hidden_dim=32, two_hyper_layers=False
    n_agents, n_states, qmix_hidden_dim = 4, 32, 32

    key = jax.random.PRNGKey(0)
    k_q, k_s, k_p = jax.random.split(key, 3)
    params = init_params(k_p, n_agents, n_states, qmix_hidden_dim)

    run = functools.partial(qstar_forward, n_agents=n_agents, n_states=n_states,
                            qmix_hidden_dim=qmix_hidden_dim)
    ref = functools.partial(qstar_reference, n_agents=n_agents, n_states=n_states,
                            qmix_hidden_dim=qmix_hidden_dim)

    # Test 1: small shapes, f32 streaming (tight math check). B=16, single block.
    episode_num, episode_len = 2, 8
    q_values = jax.random.normal(k_q, (episode_num, episode_len, n_agents), jnp.float32)
    states = jax.random.normal(k_s, (episode_num, episode_len, n_states), jnp.float32)
    out1 = jax.block_until_ready(run(q_values, states, params, input_dtype=jnp.float32))
    ref1 = ref(q_values, states, params)
    assert out1.shape == (episode_num, episode_len, 1)
    assert jnp.allclose(out1, ref1, atol=5e-4, rtol=5e-4)

    # Test 2: multi-step grid with a partial edge block (B=300, tile=128 -> 3 steps).
    episode_num2, episode_len2 = 3, 100
    q2 = jax.random.normal(k_q, (episode_num2, episode_len2, n_agents), jnp.float32)
    s2 = jax.random.normal(k_s, (episode_num2, episode_len2, n_states), jnp.float32)
    out2 = jax.block_until_ready(run(q2, s2, params, tile_b=128, input_dtype=jnp.float32))
    ref2 = ref(q2, s2, params)
    assert out2.shape == (episode_num2, episode_len2, 1)
    assert jnp.allclose(out2, ref2, atol=5e-4, rtol=5e-4)

    # Test 3: default fast path (bf16 streaming of states/q/fused-W, f32 accum).
    out3 = jax.block_until_ready(run(q2, s2, params))
    assert out3.shape == (episode_num2, episode_len2, 1)
    assert bool(jnp.isfinite(out3).all())
    rel_l2 = float(jnp.linalg.norm(out3 - ref2) / jnp.linalg.norm(ref2))
    assert rel_l2 < 3e-2, rel_l2

    print("KERNEL_OK")
</pallas_src>

<mosaic_0001>
module attributes {stable_mosaic.version = 11 : i64} {
  func.func @_qstar_kernel(%arg0: i32, %arg1: memref<36x16xf32, #tpu.memory_space<vmem>>, %arg2: memref<224x32xf32, #tpu.memory_space<vmem>>, %arg3: memref<224x1xf32, #tpu.memory_space<vmem>>, %arg4: memref<32x1xf32, #tpu.memory_space<vmem>>, %arg5: memref<1x1xf32, #tpu.memory_space<smem>>, %arg6: memref<1x16xf32, #tpu.memory_space<vmem>>) attributes {dimension_semantics = [#tpu.dimension_semantics<parallel>], iteration_bounds = array<i64: 1>, scalar_prefetch = 0 : i64, scratch_operands = 0 : i64, tpu.core_type = #tpu.core_type<tc>, window_params = [{transform_indices = @transform_0, window_bounds = array<i64: 36, 16>}, {pipeline_mode = #tpu.pipeline_mode<synchronous>, transform_indices = @transform_1, window_bounds = array<i64: 224, 32>}, {pipeline_mode = #tpu.pipeline_mode<synchronous>, transform_indices = @transform_2, window_bounds = array<i64: 224, 1>}, {pipeline_mode = #tpu.pipeline_mode<synchronous>, transform_indices = @transform_3, window_bounds = array<i64: 32, 1>}, {transform_indices = @transform_4, window_bounds = array<i64: 1, 1>}, {transform_indices = @transform_5, window_bounds = array<i64: 1, 16>}]} {
    %c0 = arith.constant 0 : index
    %c0_0 = arith.constant 0 : index
    %0 = vector.load %arg1[%c0, %c0_0] : memref<36x16xf32, #tpu.memory_space<vmem>>, vector<32x16xf32>
    %c0_1 = arith.constant 0 : index
    %c0_2 = arith.constant 0 : index
    %1 = vector.load %arg2[%c0_1, %c0_2] : memref<224x32xf32, #tpu.memory_space<vmem>>, vector<224x32xf32>
    %cst = arith.constant dense<0.000000e+00> : vector<224x16xf32>
    %2 = tpu.matmul %1, %0, %cst {dimension_numbers = #tpu.dot_dimension_numbers<[1], [0], [0], [1], [0, 0, 1, 1], [], []>} : vector<224x32xf32>, vector<32x16xf32>, vector<224x16xf32> -> vector<224x16xf32>
    %c0_3 = arith.constant 0 : index
    %c0_4 = arith.constant 0 : index
    %3 = vector.load %arg3[%c0_3, %c0_4] : memref<224x1xf32, #tpu.memory_space<vmem>>, vector<224x1xf32>
    %4 = vector.broadcast %3 : vector<224x1xf32> to vector<224x16xf32>
    %5 = arith.addf %2, %4 : vector<224x16xf32>
    %6 = vector.extract_strided_slice %5 {offsets = [128, 0], sizes = [32, 16], strides = [1, 1]} : vector<224x16xf32> to vector<32x16xf32>
    %7 = vector.extract_strided_slice %5 {offsets = [160, 0], sizes = [32, 16], strides = [1, 1]} : vector<224x16xf32> to vector<32x16xf32>
    %8 = vector.extract_strided_slice %5 {offsets = [192, 0], sizes = [32, 16], strides = [1, 1]} : vector<224x16xf32> to vector<32x16xf32>
    %cst_5 = arith.constant 0.000000e+00 : f32
    %9 = vector.broadcast %cst_5 : f32 to vector<32x16xf32>
    %10 = arith.maximumf %8, %9 : vector<32x16xf32>
    %c32 = arith.constant 32 : index
    %c0_6 = arith.constant 0 : index
    %11 = vector.load %arg1[%c32, %c0_6] : memref<36x16xf32, #tpu.memory_space<vmem>>, vector<1x16xf32>
    %12 = vector.extract_strided_slice %5 {offsets = [0, 0], sizes = [32, 16], strides = [1, 1]} : vector<224x16xf32> to vector<32x16xf32>
    %13 = vector.broadcast %11 : vector<1x16xf32> to vector<32x16xf32>
    %14 = arith.mulf %13, %12 : vector<32x16xf32>
    %15 = arith.addf %6, %14 : vector<32x16xf32>
    %c33 = arith.constant 33 : index
    %c0_7 = arith.constant 0 : index
    %16 = vector.load %arg1[%c33, %c0_7] : memref<36x16xf32, #tpu.memory_space<vmem>>, vector<1x16xf32>
    %17 = vector.extract_strided_slice %5 {offsets = [32, 0], sizes = [32, 16], strides = [1, 1]} : vector<224x16xf32> to vector<32x16xf32>
    %18 = vector.broadcast %16 : vector<1x16xf32> to vector<32x16xf32>
    %19 = arith.mulf %18, %17 : vector<32x16xf32>
    %20 = arith.addf %15, %19 : vector<32x16xf32>
    %c34 = arith.constant 34 : index
    %c0_8 = arith.constant 0 : index
    %21 = vector.load %arg1[%c34, %c0_8] : memref<36x16xf32, #tpu.memory_space<vmem>>, vector<1x16xf32>
    %22 = vector.extract_strided_slice %5 {offsets = [64, 0], sizes = [32, 16], strides = [1, 1]} : vector<224x16xf32> to vector<32x16xf32>
    %23 = vector.broadcast %21 : vector<1x16xf32> to vector<32x16xf32>
    %24 = arith.mulf %23, %22 : vector<32x16xf32>
    %25 = arith.addf %20, %24 : vector<32x16xf32>
    %c35 = arith.constant 35 : index
    %c0_9 = arith.constant 0 : index
    %26 = vector.load %arg1[%c35, %c0_9] : memref<36x16xf32, #tpu.memory_space<vmem>>, vector<1x16xf32>
    %27 = vector.extract_strided_slice %5 {offsets = [96, 0], sizes = [32, 16], strides = [1, 1]} : vector<224x16xf32> to vector<32x16xf32>
    %28 = vector.broadcast %26 : vector<1x16xf32> to vector<32x16xf32>
    %29 = arith.mulf %28, %27 : vector<32x16xf32>
    %30 = arith.addf %25, %29 : vector<32x16xf32>
    %cst_10 = arith.constant 0.000000e+00 : f32
    %31 = vector.broadcast %cst_10 : f32 to vector<32x16xf32>
    %32 = arith.cmpf ogt, %30, %31 : vector<32x16xf32>
    %cst_11 = arith.constant 0.000000e+00 : f32
    %33 = vector.broadcast %cst_11 : f32 to vector<32x16xf32>
    %34 = arith.minimumf %30, %33 : vector<32x16xf32>
    %35 = math.exp %34 : vector<32x16xf32>
    %cst_12 = arith.constant 1.000000e+00 : f32
    %36 = vector.broadcast %cst_12 : f32 to vector<32x16xf32>
    %37 = arith.subf %35, %36 : vector<32x16xf32>
    %38 = arith.select %32, %30, %37 : vector<32x16xi1>, vector<32x16xf32>
    %39 = arith.mulf %38, %7 : vector<32x16xf32>
    %c0_13 = arith.constant 0 : index
    %c0_14 = arith.constant 0 : index
    %40 = vector.load %arg4[%c0_13, %c0_14] : memref<32x1xf32, #tpu.memory_space<vmem>>, vector<32x1xf32>
    %41 = vector.broadcast %40 : vector<32x1xf32> to vector<32x16xf32>
    %42 = arith.mulf %10, %41 : vector<32x16xf32>
    %43 = arith.addf %39, %42 : vector<32x16xf32>
    %cst_15 = arith.constant dense<0.000000e+00> : vector<16xf32>
    %44 = vector.multi_reduction <add>, %43, %cst_15 [0] : vector<32x16xf32> to vector<16xf32>
    %45 = vector.shape_cast %44 : vector<16xf32> to vector<1x16xf32>
    %c0_16 = arith.constant 0 : index
    %c0_17 = arith.constant 0 : index
    %46 = memref.load %arg5[%c0_16, %c0_17] : memref<1x1xf32, #tpu.memory_space<smem>>
    %47 = vector.broadcast %46 : f32 to vector<1x16xf32>
    %48 = arith.addf %45, %47 : vector<1x16xf32>
    %c0_18 = arith.constant 0 : index
    %c0_19 = arith.constant 0 : index
    %49 = vector.load %arg6[%c0_18, %c0_19] : memref<1x16xf32, #tpu.memory_space<vmem>>, vector<1x16xf32>
    tpu.vector_store %arg6[%c0_18, %c0_19], %48 {strides = array<i32>} : memref<1x16xf32, #tpu.memory_space<vmem>>, vector<1x16xf32>,
    return
  }
  func.func @transform_0(%arg0: i32) -> (i32, i32) {
    %c0_i32 = arith.constant 0 : i32
    %c0_i32_0 = arith.constant 0 : i32
    return %c0_i32, %arg0 : i32, i32
  }
  func.func @transform_1(%arg0: i32) -> (i32, i32) {
    %c0_i32 = arith.constant 0 : i32
    %c0_i32_0 = arith.constant 0 : i32
    %c0_i32_1 = arith.constant 0 : i32
    return %c0_i32, %c0_i32_0 : i32, i32
  }
  func.func @transform_2(%arg0: i32) -> (i32, i32) {
    %c0_i32 = arith.constant 0 : i32
    %c0_i32_0 = arith.constant 0 : i32
    %c0_i32_1 = arith.constant 0 : i32
    return %c0_i32, %c0_i32_0 : i32, i32
  }
  func.func @transform_3(%arg0: i32) -> (i32, i32) {
    %c0_i32 = arith.constant 0 : i32
    %c0_i32_0 = arith.constant 0 : i32
    %c0_i32_1 = arith.constant 0 : i32
    return %c0_i32, %c0_i32_0 : i32, i32
  }
  func.func @transform_4(%arg0: i32) -> (i32, i32) {
    %c0_i32 = arith.constant 0 : i32
    %c0_i32_0 = arith.constant 0 : i32
    %c0_i32_1 = arith.constant 0 : i32
    return %c0_i32, %c0_i32_0 : i32, i32
  }
  func.func @transform_5(%arg0: i32) -> (i32, i32) {
    %c0_i32 = arith.constant 0 : i32
    %c0_i32_0 = arith.constant 0 : i32
    return %c0_i32, %arg0 : i32, i32
  }
}

</mosaic_0001>

<bundles_post_ra>
// kernel: tpu_custom_call.1
= control target key start
LH: loop header
LB: loop body
LE: loop exit
PB: predicated region body
PF: predicated region fallthrough
CT: control target
= control target key end

     0   :  { %vm222_vm0 = vcmask 261120   ;;  %v821_v10 = vmov 0   ;;  %s1103_s0 = inlined_call_operand.vmem [shape: f32[36,16], index: 0, kind: input, shape index: {}]   ;;  %s1104_s1 = inlined_call_operand.vmem [shape: f32[224,32], index: 1, kind: input, shape index: {}]   ;;  %s1105_s2 = inlined_call_operand.vmem [shape: f32[224,1], index: 2, kind: input, shape index: {}]   ;;  %s1106_s3 = inlined_call_operand.vmem [shape: f32[32,1], index: 3, kind: input, shape index: {}]   ;;  %s1107_s4 = inlined_call_operand.<no memory space> [shape: f32[1,1], index: 4, kind: input, shape index: {}]   ;;  %s1108_s5 = inlined_call_operand.hbm [shape: f32[1,16], index: 5, kind: output, shape index: {}]  }
   0x1   :  { %v25_v0 = vld [vmem:[%s1103_s0 + $0x18] sm:$0xff]  ;;  %v24_v1 = vld [vmem:[%s1103_s0 + $0x10] sm:$0xff]  ;;  %v23_v2 = vld [vmem:[%s1103_s0 + $0x8] sm:$0xff]  ;;  %789 = vset.pattern.permute.xlu0 %v821_v10  ;;  %790 = vset.pattern.permute.xlu1 %v821_v10 }
   0x2   :  { %729 = vmatprep.subr.mxu0 %v25_v0  ;;  %779 = vmatprep.subr.mxu1 %v25_v0  ;;  %v22_v3 = vld [vmem:[%s1103_s0] sm:$0xff]  ;;  %v40_v5 = vld [vmem:[%s1104_s1 + $0x70] sm:$0xff]  ;;  %v27_v6 = vld [vmem:[%s1104_s1 + $0x8] sm:$0xff] }
   0x3   :  { %730 = vmatpush3.msra.mxu0 %v25_v0  ;;  %783 = vmatpush3.msra.mxu1 %v25_v0  ;;  %v26_v4 = vld [vmem:[%s1104_s1] sm:$0xff]  ;;  %v41_v7 = vld [vmem:[%s1104_s1 + $0x78] sm:$0xff]  ;;  %v28_v9 = vld [vmem:[%s1104_s1 + $0x10] sm:$0xff] }
   0x4   :  { %731 = vmatprep.subr.mxu0 %v24_v1  ;;  %780 = vmatprep.subr.mxu1 %v24_v1  ;;  %v54_v8 = vld [vmem:[%s1105_s2] sm:$0xff]  ;;  %v56_v11 = vld [vmem:[%s1105_s2 + $0x10] sm:$0xff]  ;;  %v29_v13 = vld [vmem:[%s1104_s1 + $0x18] sm:$0xff] }
   0x5   :  { %732 = vmatpush3.msra.mxu0 %v24_v1  ;;  %784 = vmatpush3.msra.mxu1 %v24_v1  ;;  %v42_v12 = vld [vmem:[%s1104_s1 + $0x80] sm:$0xff]  ;;  %v43_v14 = vld [vmem:[%s1104_s1 + $0x88] sm:$0xff]  ;;  %v44_v17 = vld [vmem:[%s1104_s1 + $0x90] sm:$0xff] }
   0x6   :  { %733 = vmatprep.subr.mxu0 %v23_v2  ;;  %781 = vmatprep.subr.mxu1 %v23_v2  ;;  %v55_v15 = vld [vmem:[%s1105_s2 + $0x8] sm:$0xff]  ;;  %v30_v16 = vld [vmem:[%s1104_s1 + $0x20] sm:$0xff]  ;;  %v45_v20 = vld [vmem:[%s1104_s1 + $0x98] sm:$0xff] }
   0x7   :  { %734 = vmatpush3.msra.mxu0 %v23_v2  ;;  %785 = vmatpush3.msra.mxu1 %v23_v2  ;;  %v58_v18 = vld [vmem:[%s1105_s2 + $0x20] sm:$0xff]  ;;  %v31_v19 = vld [vmem:[%s1104_s1 + $0x28] sm:$0xff]  ;;  %v32_v22 = vld [vmem:[%s1104_s1 + $0x30] sm:$0xff] }
   0x8   :  { %735 = vmatprep.subr.mxu0 %v22_v3  ;;  %782 = vmatprep.subr.mxu1 %v22_v3  ;;  %v59_v21 = vld [vmem:[%s1105_s2 + $0x28] sm:$0xff]  ;;  %v46_v23 = vld [vmem:[%s1104_s1 + $0xa0] sm:$0xff]  ;;  %v33_v25 = vld [vmem:[%s1104_s1 + $0x38] sm:$0xff] }
   0x9   :  { %736 = vmatpush3.msra.mxu0 %v22_v3  ;;  %786 = vmatpush3.msra.mxu1 %v22_v3  ;;  %v70_v24 = vld [vmem:[%s1105_s2 + $0x80] sm:$0xff]  ;;  %v47_v26 = vld [vmem:[%s1104_s1 + $0xa8] sm:$0xff]  ;;  %v48_v29 = vld [vmem:[%s1104_s1 + $0xb0] sm:$0xff] }
   0xa   :  { %737 = vmatprep.mubr.msk.f32.mxu0 %vm222_vm0, %v26_v4  ;;  %758 = vmatprep.mubr.msk.f32.mxu1 %vm222_vm0, %v40_v5  ;;  %v71_v27 = vld [vmem:[%s1105_s2 + $0x88] sm:$0xff]  ;;  %v34_v28 = vld [vmem:[%s1104_s1 + $0x40] sm:$0xff] }
   0xb   :  { %738 = vmatmul.mubr.msk.f32.vlgmr.msra.gmra.mxu0 %vm222_vm0, %v27_v6  ;;  %759 = vmatmul.mubr.msk.f32.vlgmr.msra.gmra.mxu1 %vm222_vm0, %v41_v7 }
   0xc   :  { %84 = vperm.xlu0 %789, %v54_v8   ;;  %740 = vmatprep.mubr.msk.f32.mxu0 %vm222_vm0, %v28_v9 }
   0xd   :  { %94 = vperm.xlu1 %790, %v56_v11   ;;  %761 = vmatprep.mubr.msk.f32.mxu1 %vm222_vm0, %v42_v12 }
   0xf   :  { %741 = vmatmul.mubr.msk.f32.gmra.mxu0 %vm222_vm0, %v29_v13  ;;  %762 = vmatmul.mubr.msk.f32.gmra.mxu1 %vm222_vm0, %v43_v14 }
  0x10   :  { %89 = vperm.xlu0 %789, %v55_v15   ;;  %743 = vmatprep.mubr.msk.f32.mxu0 %vm222_vm0, %v30_v16 }
  0x11   :  { %764 = vmatprep.mubr.msk.f32.mxu1 %vm222_vm0, %v44_v17  ;;  %104 = vperm.xlu1 %790, %v58_v18  }
  0x13   :  { %744 = vmatmul.mubr.msk.f32.gmra.mxu0 %vm222_vm0, %v31_v19  ;;  %765 = vmatmul.mubr.msk.f32.gmra.mxu1 %vm222_vm0, %v45_v20 }
  0x14   :  { %109 = vperm.xlu0 %789, %v59_v21   ;;  %746 = vmatprep.mubr.msk.f32.mxu0 %vm222_vm0, %v32_v22 }
  0x15   :  { %767 = vmatprep.mubr.msk.f32.mxu1 %vm222_vm0, %v46_v23  ;;  %164 = vperm.xlu1 %790, %v70_v24  }
  0x16   :  { %11 = vsyncpa [#allocation4], 0  ;;  %v57_v30 = vld [vmem:[%s1105_s2 + $0x18] sm:$0xff]  ;;  %v35_v31 = vld [vmem:[%s1104_s1 + $0x48] sm:$0xff]  ;;  %vm628_vm5 = vcmask 130048   ;;  %s822_s26 = smov [#allocation3]  }
  0x17   :  { %747 = vmatmul.mubr.msk.f32.gmra.mxu0 %vm222_vm0, %v33_v25  ;;  %768 = vmatmul.mubr.msk.f32.gmra.mxu1 %vm222_vm0, %v47_v26  ;;  %v49_v32 = vld [vmem:[%s1104_s1 + $0xb8] sm:$0xff]  ;;  %v60_v33 = vld [vmem:[%s1105_s2 + $0x30] sm:$0xff]  ;;  %v50_v35 = vld [vmem:[%s1104_s1 + $0xc0] sm:$0xff]  ;;  %s653_s27 = sshll.u32 %s822_s26, 4  ;;  %vm645_vm6 = vcmask 122880   ;;  %s654_s27 = int_to_ptr.vmem [resolvable:$true] %s653_s27 }
  0x18   :  { %169 = vperm.xlu0 %789, %v71_v27   ;;  %749 = vmatprep.mubr.msk.f32.mxu0 %vm222_vm0, %v34_v28  ;;  %v36_v34 = vld [vmem:[%s1104_s1 + $0x50] sm:$0xff]  ;;  %v62_v36 = vld [vmem:[%s1105_s2 + $0x40] sm:$0xff]  ;;  %v37_v37 = vld [vmem:[%s1104_s1 + $0x58] sm:$0xff]  ;;  %s799_s28 = scalar_lea.vmem %s654_s27, 16  ;;  %s803_s29 = scalar_lea.vmem %s654_s27, 32 }
  0x19   :  { %770 = vmatprep.mubr.msk.f32.mxu1 %vm222_vm0, %v48_v29  ;;  %99 = vperm.xlu1 %790, %v57_v30   ;;  %v51_v38 = vld [vmem:[%s1104_s1 + $0xc8] sm:$0xff]  ;;  %v38_v40 = vld [vmem:[%s1104_s1 + $0x60] sm:$0xff]  ;;  %v52_v41 = vld [vmem:[%s1104_s1 + $0xd0] sm:$0xff]  ;;  %p800_p0 = scmp.ne.s32.totalorder %s654_s27, %s799_s28  ;;  %p804_p1 = scmp.lt.s32.totalorder %s654_s27, %s654_s27 }
  0x1a   :  { %v63_v39 = vld [vmem:[%s1105_s2 + $0x48] sm:$0xff]  ;;  %v72_v42 = vld [vmem:[%s1105_s2 + $0x90] sm:$0xff]  ;;  %v53_v44 = vld [vmem:[%s1104_s1 + $0xd8] sm:$0xff]  ;;  %p805_p2 = scmp.lt.s32.totalorder %s803_s29, %s799_s28 }
  0x1b   :  { %750 = vmatmul.mubr.msk.f32.gmra.mxu0 %vm222_vm0, %v35_v31  ;;  %771 = vmatmul.mubr.msk.f32.gmra.mxu1 %vm222_vm0, %v49_v32  ;;  %v39_v43 = vld [vmem:[%s1104_s1 + $0x68] sm:$0xff]  ;;  %v61_v45 = vld [vmem:[%s1105_s2 + $0x38] sm:$0xff]  ;;  %v64_v46 = vld [vmem:[%s1105_s2 + $0x50] sm:$0xff] }
  0x1c   :  { %114 = vperm.xlu0 %789, %v60_v33   ;;  %752 = vmatprep.mubr.msk.f32.mxu0 %vm222_vm0, %v36_v34  ;;  %v66_v47 = vld [vmem:[%s1105_s2 + $0x60] sm:$0xff]  ;;  %v67_v48 = vld [vmem:[%s1105_s2 + $0x68] sm:$0xff]  ;;  %v73_v49 = vld [vmem:[%s1105_s2 + $0x98] sm:$0xff]  ;;  %p806_p3 = por %p805_p2, %p804_p1 }
  0x1d   :  { %773 = vmatprep.mubr.msk.f32.mxu1 %vm222_vm0, %v50_v35  ;;  %124 = vperm.xlu1 %790, %v62_v36   ;;  %v65_v50 = vld [vmem:[%s1105_s2 + $0x58] sm:$0xff]  ;;  %v68_v51 = vld [vmem:[%s1105_s2 + $0x70] sm:$0xff]  ;;  %v78_v53 = vld [vmem:[%s1105_s2 + $0xc0] sm:$0xff] }
  0x1e   :  { %v69_v52 = vld [vmem:[%s1105_s2 + $0x78] sm:$0xff]  ;;  %v79_v54 = vld [vmem:[%s1105_s2 + $0xc8] sm:$0xff]  ;;  %v74_v55 = vld [vmem:[%s1105_s2 + $0xa0] sm:$0xff]  ;;  %p807_p4 = pnand %p806_p3, %p800_p0 }
  0x1f   :  { %753 = vmatmul.mubr.msk.f32.gmra.mxu0 %vm222_vm0, %v37_v37  ;;  %774 = vmatmul.mubr.msk.f32.gmra.mxu1 %vm222_vm0, %v51_v38  ;;  %v75_v56 = vld [vmem:[%s1105_s2 + $0xa8] sm:$0xff]  ;;  %v80_v57 = vld [vmem:[%s1105_s2 + $0xd0] sm:$0xff]  ;;  %v81_v59 = vld [vmem:[%s1105_s2 + $0xd8] sm:$0xff] }
  0x20   :  { %129 = vperm.xlu0 %789, %v63_v39   ;;  %755 = vmatprep.mubr.msk.f32.mxu0 %vm222_vm0, %v38_v40  ;;  %v76_v58 = vld [vmem:[%s1105_s2 + $0xb0] sm:$0xff]  ;;  %v596_v60 = vld [vmem:[%s1106_s3] sm:$0xff]  ;;  %v597_v61 = vld [vmem:[%s1106_s3 + $0x8] sm:$0xff] }
  0x21   :  { %776 = vmatprep.mubr.msk.f32.mxu1 %vm222_vm0, %v52_v41  ;;  %174 = vperm.xlu1 %790, %v72_v42   ;;  %v77_v62 = vld [vmem:[%s1105_s2 + $0xb8] sm:$0xff]  ;;  %v598_v63 = vld [vmem:[%s1106_s3 + $0x10] sm:$0xff]  ;;  %v689_v36 = vld [vmem:[%s1103_s0 + $0x20] ss:$0 sm:$0xff] }
  0x22   :  { %v599_v0 = vld [vmem:[%s1106_s3 + $0x18] sm:$0xff] }
  0x23   :  { %756 = vmatmul.mubr.msk.f32.gmra.mxu0 %vm222_vm0, %v39_v43  ;;  %777 = vmatmul.mubr.msk.f32.gmra.mxu1 %vm222_vm0, %v53_v44  ;;  %v690_v43 = vld [vmem:[%s1103_s0 + $0x21] ss:$0 sm:$0xff] }
  0x24   :  { %119 = vperm.xlu0 %789, %v61_v45  }
  0x25   :  { %134 = vperm.xlu1 %790, %v64_v46  }
  0x28   :  { %144 = vperm.xlu0 %789, %v66_v47  }
  0x29   :  { %149 = vperm.xlu1 %790, %v67_v48  }
  0x2c   :  { %179 = vperm.xlu0 %789, %v73_v49  }
  0x2d   :  { %139 = vperm.xlu1 %790, %v65_v50  }
  0x30   :  { %154 = vperm.xlu0 %789, %v68_v51  }
  0x31   :  { %159 = vperm.xlu1 %790, %v69_v52  }
  0x34   :  { %204 = vperm.xlu0 %789, %v78_v53  }
  0x35   :  { %209 = vperm.xlu1 %790, %v79_v54   ;;  %v691_v54 = vld [vmem:[%s1103_s0 + $0x22] ss:$0 sm:$0xff] }
  0x38   :  { %184 = vperm.xlu0 %789, %v74_v55  }
  0x39   :  { %189 = vperm.xlu1 %790, %v75_v56  }
  0x3c   :  { %214 = vperm.xlu0 %789, %v80_v57  }
  0x3d   :  { %194 = vperm.xlu1 %790, %v76_v58  }
  0x40   :  { %219 = vperm.xlu0 %789, %v81_v59  }
  0x41   :  { %602 = vperm.xlu1 %790, %v596_v60  }
  0x44   :  { %607 = vperm.xlu0 %789, %v597_v61   ;;  %v692_v61 = vld [vmem:[%s1103_s0 + $0x23] ss:$0 sm:$0xff] }
  0x45   :  { %199 = vperm.xlu1 %790, %v77_v62  }
  0x48   :  { %612 = vperm.xlu0 %789, %v598_v63  }
  0x49   :  { %617 = vperm.xlu1 %790, %v599_v0  }
  0x87   :  { %v85_v1 = vpop.permute.xlu0 %84 }
  0x88   :  { %v95_v2 = vpop.permute.xlu1 %94 }
  0x8b   :  { %v90_v3 = vpop.permute.xlu0 %89 }
  0x8c   :  { %v105_v4 = vpop.permute.xlu1 %104 }
  0x8f   :  { %v110_v5 = vpop.permute.xlu0 %109 }
  0x90   :  { %v165_v6 = vpop.permute.xlu1 %164 }
  0x93   :  { %v170_v7 = vpop.permute.xlu0 %169 }
  0x94   :  { %v100_v8 = vpop.permute.xlu1 %99 }
  0x97   :  { %v115_v9 = vpop.permute.xlu0 %114 }
  0x98   :  { %v125_v10 = vpop.permute.xlu1 %124 }
  0x9b   :  { %v130_v11 = vpop.permute.xlu0 %129 }
  0x9c   :  { %v175_v12 = vpop.permute.xlu1 %174 }
  0x9f   :  { %v120_v13 = vpop.permute.xlu0 %119 }
  0xa0   :  { %v135_v14 = vpop.permute.xlu1 %134 }
  0xa3   :  { %v1073_v19 = vpop.permute.xlu0 %144 }
  0xa4   :  { %v1075_v21 = vpop.permute.xlu1 %149 }
  0xa7   :  { %v180_v28 = vpop.permute.xlu0 %179 }
  0xa8   :  { %v140_v29 = vpop.permute.xlu1 %139 }
  0xab   :  { %v155_v40 = vpop.permute.xlu0 %154 }
  0xac   :  { %v160_v41 = vpop.permute.xlu1 %159 }
  0xcb   :  { %v739_v15 = vpop.f32.mrf.mxu0  ;;  %v760_v16 = vpop.f32.mrf.mxu1 }
  0xcc   :  { %v379_v33 = vadd.f32 %v739_v15, %v90_v3  ;;  %v449_v46 = vadd.f32 %v760_v16, %v160_v41 }
  0xcd   :  { %v373_v17 = vpop.f32.mrf.mxu0  ;;  %v443_v18 = vpop.f32.mrf.mxu1 }
  0xce   :  { %v522_v50 = vmul.f32 %v689_v36, %v379_v33  ;;  %v374_v55 = vadd.f32 %v373_v17, %v85_v1  ;;  %v444_v56 = vadd.f32 %v443_v18, %v155_v40  ;;  %v205_v1 = vpop.permute.xlu0 %204  ;;  %v563_v16 = vmul.f32 %v692_v61, %v449_v46 }
  0xcf   :  { %v742_v20 = vpop.f32.mrf.mxu0  ;;  %v763_v22 = vpop.f32.mrf.mxu1 }
  0xd0   :  { %v389_v34 = vadd.f32 %v742_v20, %v100_v8  ;;  %v459_v47 = vadd.f32 %v763_v22, %v170_v7  ;;  %v521_v17 = vmul.f32 %v689_v36, %v374_v55 }
  0xd1   :  { %v383_v23 = vpop.f32.mrf.mxu0  ;;  %v453_v24 = vpop.f32.mrf.mxu1 }
  0xd2   :  { %v384_v42 = vadd.f32 %v383_v23, %v95_v2  ;;  %v524_v51 = vmul.f32 %v689_v36, %v389_v34  ;;  %v526_v3 = vadd.f32 %v522_v50, %v459_v47 }
  0xd3   :  { %v745_v25 = vpop.f32.mrf.mxu0  ;;  %v766_v26 = vpop.f32.mrf.mxu1 }
  0xd4   :  { %v399_v37 = vadd.f32 %v745_v25, %v110_v5  ;;  %v469_v44 = vadd.f32 %v766_v26, %v180_v28  ;;  %v523_v62 = vmul.f32 %v689_v36, %v384_v42  ;;  %v454_v5 = vadd.f32 %v453_v24, %v165_v6  ;;  %v185_v36 = vpop.permute.xlu0 %184 }
  0xd5   :  { %v393_v27 = vpop.f32.mrf.mxu0  ;;  %v463_v30 = vpop.f32.mrf.mxu1  ;;  %v562_v24 = vmul.f32 %v692_v61, %v444_v56 }
  0xd6   :  { %v464_v52 = vadd.f32 %v463_v30, %v175_v12  ;;  %v535_v57 = vmul.f32 %v690_v43, %v399_v37  ;;  %v394_v58 = vadd.f32 %v393_v27, %v105_v4  ;;  %v528_v63 = vadd.f32 %v524_v51, %v469_v44 }
  0xd7   :  { %v748_v31 = vpop.f32.mrf.mxu0  ;;  %v1080_v38 = vpop.f32.mrf.mxu1 }
  0xd8   :  { %v409_v35 = vadd.f32 %v748_v31, %v120_v13  ;;  %v527_v12 = vadd.f32 %v523_v62, %v464_v52  ;;  %v539_v18 = vadd.f32 %v535_v57, %v526_v3  ;;  %v534_v20 = vmul.f32 %v690_v43, %v394_v58  ;;  %v215_v51 = vpop.permute.xlu0 %214 }
  0xd9   :  { %v403_v32 = vpop.f32.mrf.mxu0  ;;  %v1088_v59 = vpop.f32.mrf.mxu1 }
  0xda   :  { %v404_v45 = vadd.f32 %v403_v32, %v115_v9  ;;  %v537_v53 = vmul.f32 %v690_v43, %v409_v35 }
  0xdb   :  { %v751_v39 = vpop.f32.mrf.mxu0  ;;  %v772_v22 = vpop.f32.mrf.mxu1 }
  0xdc   :  { %v419_v48 = vadd.f32 %v751_v39, %v130_v11  ;;  %v536_v0 = vmul.f32 %v690_v43, %v404_v45  ;;  %v210_v11 = vpop.permute.xlu1 %209  ;;  %v541_v4 = vadd.f32 %v537_v53, %v528_v63  ;;  %v220_v55 = vpop.permute.xlu0 %219 }
  0xdd   :  { %v413_v49 = vpop.f32.mrf.mxu0  ;;  %v483_v35 = vpop.f32.mrf.mxu1 }
  0xde   :  { %v548_v7 = vmul.f32 %v691_v54, %v419_v48  ;;  %v414_v8 = vadd.f32 %v413_v49, %v125_v10  ;;  %v540_v25 = vadd.f32 %v536_v0, %v527_v12  ;;  %v525_v10 = vadd.f32 %v521_v17, %v454_v5 }
  0xdf   :  { %v754_v60 = vpop.f32.mrf.mxu0  ;;  %v775_v46 = vpop.f32.mrf.mxu1 }
  0xe0   :  { %v429_v2 = vadd.f32 %v754_v60, %v140_v29  ;;  %v552_v28 = vadd.f32 %v548_v7, %v539_v18  ;;  %v547_v29 = vmul.f32 %v691_v54, %v414_v8  ;;  %v538_v34 = vadd.f32 %v534_v20, %v525_v10  ;;  %v190_v41 = vpop.permute.xlu1 %189  ;;  %v608_v0 = vpop.permute.xlu0 %607 }
  0xe1   :  { %v423_v9 = vpop.f32.mrf.mxu0  ;;  %v493_v52 = vpop.f32.mrf.mxu1  ;;  %v499_v57 = vadd.f32 %v775_v46, %v210_v11  ;;  %v479_v3 = vadd.f32 %v1080_v38, %v190_v41 }
  0xe2   :  { %v550_v13 = vmul.f32 %v691_v54, %v429_v2  ;;  %v424_v15 = vadd.f32 %v423_v9, %v135_v14  ;;  %v551_v42 = vadd.f32 %v547_v29, %v538_v34  ;;  %v474_v9 = vadd.f32 %v1088_v59, %v185_v36 }
  0xe3   :  { %v757_v23 = vpop.f32.mrf.mxu0  ;;  %v513_v5 = vmax.f32 %v499_v57, 0.0 }
  0xe4   :  { %v554_v26 = vadd.f32 %v550_v13, %v541_v4  ;;  %v549_v27 = vmul.f32 %v691_v54, %v424_v15  ;;  %v439_v6 = vadd.f32 %v757_v23, %v1075_v21  ;;  %v778_v54 = vpop.f32.mrf.mxu1 }
  0xe5   :  { %v433_v30 = vpop.f32.mrf.mxu0  ;;  %v509_v4 = vadd.f32 %v778_v54, %v220_v55  ;;  %v621_v20 = vmul.f32 %v608_v0, %v513_v5 }
  0xe6   :  { %v567_v31 = vadd.f32 %v563_v16, %v554_v26  ;;  %v553_v32 = vadd.f32 %v549_v27, %v540_v25  ;;  %v561_v33 = vmul.f32 %v692_v61, %v439_v6  ;;  %v434_v14 = vadd.f32 %v433_v30, %v1073_v19  ;;  %v195_v19 = vpop.permute.xlu1 %194  ;;  %v503_v58 = vpop.f32.mrf.mxu1 }
  0xe7   :  { %v504_v62 = vadd.f32 %v503_v58, %v215_v51  ;;  %v484_v15 = vadd.f32 %v483_v35, %v195_v19  ;;  %v515_v27 = vmax.f32 %v509_v4, 0.0 }
  0xe8   :  { %v575_v37 = vmin.f32 %v567_v31, 0.0  ;;  %v566_v39 = vadd.f32 %v562_v24, %v553_v32  ;;  %v565_v40 = vadd.f32 %v561_v33, %v552_v28  ;;  %v560_v43 = vmul.f32 %v692_v61, %v434_v14 }
  0xe9   :  { %v494_v61 = vadd.f32 %v493_v52, %v205_v1  ;;  %vm571_vm3 = vcmp.gt.f32.partialorder %v567_v31, 0.0  ;;  %v514_v1 = vmax.f32 %v504_v62, 0.0 }
  0xea   :  { %v582_v21 = vmul.f32 1.442695, %v575_v37  ;;  %v574_v44 = vmin.f32 %v566_v39, 0.0  ;;  %v573_v45 = vmin.f32 %v565_v40, 0.0  ;;  %v564_v47 = vadd.f32 %v560_v43, %v551_v42  ;;  %v603_v56 = vpop.permute.xlu1 %602 }
  0xeb   :  { %v512_v16 = vmax.f32 %v494_v61, 0.0  ;;  %vm570_vm1 = vcmp.gt.f32.partialorder %v566_v39, 0.0  ;;  %vm569_vm2 = vcmp.gt.f32.partialorder %v565_v40, 0.0 }
  0xec   :  { %791 = vpow2.f32 %v582_v21  ;;  %v580_v48 = vmul.f32 1.442695, %v574_v44  ;;  %v578_v49 = vmul.f32 1.442695, %v573_v45  ;;  %v572_v50 = vmin.f32 %v564_v47, 0.0 }
  0xed   :  { %vm568_vm4 = vcmp.gt.f32.partialorder %v564_v47, 0.0  ;;  %v620_v6 = vmul.f32 %v603_v56, %v512_v16 }
  0xee   :  { %793 = vpow2.f32 %v580_v48  ;;  %v576_v53 = vmul.f32 1.442695, %v572_v50  ;;  %v200_v2 = vpop.permute.xlu1 %199 }
  0xef   :  { %795 = vpow2.f32 %v578_v49  ;;  %v489_v12 = vadd.f32 %v772_v22, %v200_v2  ;;  %v613_v22 = vpop.permute.xlu0 %612 }
  0xf0   :  { %797 = vpow2.f32 %v576_v53  ;;  %v622_v30 = vmul.f32 %v613_v22, %v514_v1 }
  0xf2   :  { %v618_v32 = vpop.permute.xlu1 %617 }
  0xf3   :  { %v623_v33 = vmul.f32 %v618_v32, %v515_v27 }
  0xf9   :  { %v792_v60 = vpop.eup %791 }
  0xfa   :  { %v696_v7 = vadd.f32 -1.0, %v792_v60 }
  0xfb   :  { %v794_v63 = vpop.eup %793 }
  0xfc   :  { %v796_v8 = vpop.eup %795  ;;  %v695_v13 = vadd.f32 -1.0, %v794_v63  ;;  %v591_v38 = vsel %vm571_vm3, %v567_v31, %v696_v7 }
  0xfd   :  { %v694_v11 = vadd.f32 -1.0, %v796_v8  ;;  %v798_v17 = vpop.eup %797  ;;  %v595_v28 = vmul.f32 %v591_v38, %v489_v12 }
  0xfe   :  { %v590_v18 = vsel %vm570_vm1, %v566_v39, %v695_v13  ;;  %v693_v25 = vadd.f32 -1.0, %v798_v17 }
  0xff   :  { %v589_v23 = vsel %vm569_vm2, %v565_v40, %v694_v11  ;;  %v594_v59 = vmul.f32 %v590_v18, %v484_v15  ;;  %v627_v35 = vadd.f32 %v623_v33, %v595_v28 }
 0x100   :  { %v593_v26 = vmul.f32 %v589_v23, %v479_v3  ;;  %v588_v24 = vsel %vm568_vm4, %v564_v47, %v693_v25  ;;  %v643_v47 = vstv %s1107_s4 }
 0x101   :  { %v592_v29 = vmul.f32 %v588_v24, %v474_v9  ;;  %v626_v34 = vadd.f32 %v622_v30, %v594_v59  ;;  %v634_v41 = vsel %vm628_vm5, %v627_v35, 0.0 }
 0x102   :  { %v625_v10 = vadd.f32 %v621_v20, %v593_v26 }
 0x103   :  { %v624_v14 = vadd.f32 %v620_v6, %v592_v29  ;;  %v632_v39 = vsel %vm628_vm5, %v626_v34, 0.0 }
 0x104   :  { %v630_v31 = vsel %vm628_vm5, %v625_v10, 0.0 }
 0x105   :  { %v629_v36 = vsel %vm628_vm5, %v624_v14, 0.0 }
 0x106   :  { %v631_v37 = vadd.f32 %v630_v31, %v629_v36 }
 0x108   :  { %v633_v40 = vadd.f32 %v632_v39, %v631_v37 }
 0x10a   :  { %v635_v42 = vadd.f32 %v634_v41, %v633_v40 }
 0x10c   :  { %v636_v43 = vrot.slane %v635_v42, 4 }
 0x10e   :  { %v637_v21 = vadd.f32 %v636_v43, %v635_v42 }
 0x110   :  { %v638_v44 = vrot.slane %v637_v21, 2 }
 0x112   :  { %v639_v45 = vadd.f32 %v638_v44, %v637_v21 }
 0x114   :  { %v640_v46 = vrot.slane %v639_v45, 1 }
 0x116   :  { %v641_v48 = vadd.f32 %v640_v46, %v639_v45 }
 0x118   :  { %v644_v49 = vadd.f32 %v643_v47, %v641_v48 }
 0x11a   :  { %646 = vst.msk [vmem:[#allocation3] sm:$0x1] %vm645_vm6, %v644_v49 }
 0x11b   :  { %810 = shalt.err (!%p807_p4)
}
 0x11c   :  { %656 = dma.vmem_to_hbm [thread:$0]  %s654_s27, 16, %s1108_s5, [#allocation4]  }
 0x11d   :  { %819 = dma.done.wait [#allocation4], 16  }
 0x11e   :  { %820 = vsyncadd [#allocation4], 4294967280 }
 0x11f   :  { %660 = vsyncpa [#allocation4], 1 }

</bundles_post_ra>
